<compile_context>
chip_gen: v7x
topology: tpu7x:2x2x1
jax: 0.10.0
libtpu: 0.0.40
codegen_flags: <defaults>
</compile_context>

<pallas_src>
import jax
import jax.numpy as jnp
from jax.experimental import pallas as pl
from jax.experimental.pallas import tpu as pltpu

INPUT_SIZE = 784
HIDDEN1 = 90
HIDDEN2 = 45
OUTPUT_SIZE = 10

# Lane-padded hidden sizes (multiples of 128).  The output stays at 10.
H1_PAD = 128
H2_PAD = 128

# Target rows per grid step (amortizes per-step pipeline overhead; keeps
# double-buffered f32 x tiles + f32 temporaries ~10-12 MiB of VMEM).
TB_TARGET = 1024


def _round_up(n, m):
    return ((n + m - 1) // m) * m


def _cdiv(a, b):
    return (a + b - 1) // b


def _mlp_kernel(x_ref, w1_ref, b1_ref, w2_ref, b2_ref, w3_ref, b3_ref, o_ref):
    # In-kernel cast to bf16 (VPU work hidden under the x DMA), then three
    # MXU matmuls with f32 accumulation; bias + ReLU on the f32 accumulator.
    x = x_ref[...].astype(jnp.bfloat16)                               # (TB, 784)
    h1 = jnp.dot(x, w1_ref[...], preferred_element_type=jnp.float32) + b1_ref[...]
    h1 = jnp.maximum(h1, 0.0).astype(jnp.bfloat16)                    # (TB, 128)
    h2 = jnp.dot(h1, w2_ref[...], preferred_element_type=jnp.float32) + b2_ref[...]
    h2 = jnp.maximum(h2, 0.0).astype(jnp.bfloat16)                    # (TB, 128)
    out = jnp.dot(h2, w3_ref[...], preferred_element_type=jnp.float32) + b3_ref[...]
    o_ref[...] = out.astype(o_ref.dtype)                              # (TB, 10) f32


def prepare_params(params):
    """One-time padding/casting of the weights (hoisted out of the forward)."""
    w1 = jnp.pad(params["w1"].astype(jnp.bfloat16),
                 ((0, 0), (0, H1_PAD - HIDDEN1)))                     # (784, 128)
    b1 = jnp.pad(params["b1"].astype(jnp.float32),
                 ((0, 0), (0, H1_PAD - HIDDEN1)))                     # (1, 128)
    w2 = jnp.pad(params["w2"].astype(jnp.bfloat16),
                 ((0, H1_PAD - HIDDEN1), (0, H2_PAD - HIDDEN2)))      # (128, 128)
    b2 = jnp.pad(params["b2"].astype(jnp.float32),
                 ((0, 0), (0, H2_PAD - HIDDEN2)))                     # (1, 128)
    w3 = jnp.pad(params["w3"].astype(jnp.bfloat16),
                 ((0, H2_PAD - HIDDEN2), (0, 0)))                     # (128, 10)
    b3 = params["b3"].astype(jnp.float32)                             # (1, 10)
    return {"w1": w1, "b1": b1, "w2": w2, "b2": b2, "w3": w3, "b3": b3}


def digit_model_dnn_forward(x, prepared):
    """Forward pass of DigitModel_DNN.

    x: (B, 1, 28, 28) or any shape flattening to (-1, 784), float32.
    prepared: output of prepare_params().
    returns: (B, 10) float32 logits.
    """
    x2d = x.reshape(-1, INPUT_SIZE)
    B = x2d.shape[0]
    if B == 0:
        return jnp.zeros((0, OUTPUT_SIZE), jnp.float32)

    # Minimal batch padding: only to a multiple of 8 (f32 sublane), not TB.
    B_pad = _round_up(B, 8)
    if B_pad != B:
        x2d = jnp.pad(x2d, ((0, B_pad - B), (0, 0)))

    # Tile size: ~TB_TARGET rows/step; when more than one step, use an even
    # step count so v7x's two TensorCores split the batch evenly.
    n_steps = _cdiv(B_pad, TB_TARGET)
    if n_steps > 1 and n_steps % 2 == 1:
        n_steps += 1
    TB = _round_up(_cdiv(B_pad, n_steps), 8)
    grid = (_cdiv(B_pad, TB),)

    def const_spec(shape):
        return pl.BlockSpec(shape, lambda i: (0,) * len(shape))

    flops = 2 * B_pad * (INPUT_SIZE * H1_PAD + H1_PAD * H2_PAD
                         + H2_PAD * OUTPUT_SIZE)
    bytes_accessed = (
        B_pad * INPUT_SIZE * 4                                    # x (f32 in)
        + B_pad * OUTPUT_SIZE * 4                                 # out (f32)
        + (INPUT_SIZE * H1_PAD + H1_PAD * H2_PAD
           + H2_PAD * OUTPUT_SIZE) * 2                            # weights (bf16)
        + (H1_PAD + H2_PAD + OUTPUT_SIZE) * 4                     # biases (f32)
    )

    out = pl.pallas_call(
        _mlp_kernel,
        out_shape=jax.ShapeDtypeStruct((B_pad, OUTPUT_SIZE), jnp.float32),
        grid=grid,
        in_specs=[
            pl.BlockSpec((TB, INPUT_SIZE), lambda i: (i, 0)),     # x tiled on batch
            const_spec((INPUT_SIZE, H1_PAD)),                     # weights resident
            const_spec((1, H1_PAD)),
            const_spec((H1_PAD, H2_PAD)),
            const_spec((1, H2_PAD)),
            const_spec((H2_PAD, OUTPUT_SIZE)),
            const_spec((1, OUTPUT_SIZE)),
        ],
        out_specs=pl.BlockSpec((TB, OUTPUT_SIZE), lambda i: (i, 0)),
        compiler_params=pltpu.CompilerParams(
            dimension_semantics=("parallel",),
            vmem_limit_bytes=32 << 20,
        ),
        cost_estimate=pl.CostEstimate(
            flops=flops, transcendentals=0, bytes_accessed=bytes_accessed),
    )(x2d, prepared["w1"], prepared["b1"], prepared["w2"], prepared["b2"],
      prepared["w3"], prepared["b3"])

    return out if B_pad == B else out[:B]


def init_params(key):
    """Deterministic PyTorch-style (uniform +-1/sqrt(fan_in)) init, unpadded."""
    ks = jax.random.split(key, 6)

    def linear(kw, kb, fan_in, fan_out):
        bound = 1.0 / jnp.sqrt(fan_in)
        w = jax.random.uniform(kw, (fan_in, fan_out), jnp.float32, -bound, bound)
        b = jax.random.uniform(kb, (1, fan_out), jnp.float32, -bound, bound)
        return w, b

    w1, b1 = linear(ks[0], ks[1], INPUT_SIZE, HIDDEN1)
    w2, b2 = linear(ks[2], ks[3], HIDDEN1, HIDDEN2)
    w3, b3 = linear(ks[4], ks[5], HIDDEN2, OUTPUT_SIZE)
    return {"w1": w1, "b1": b1, "w2": w2, "b2": b2, "w3": w3, "b3": b3}


def _reference_forward_bf16(x, params):
    """Reference with the same bf16-in / f32-accumulate numerics as the kernel."""
    x2d = x.reshape(-1, INPUT_SIZE).astype(jnp.bfloat16)
    w1 = params["w1"].astype(jnp.bfloat16)
    w2 = params["w2"].astype(jnp.bfloat16)
    w3 = params["w3"].astype(jnp.bfloat16)
    h1 = jnp.dot(x2d, w1, preferred_element_type=jnp.float32) + params["b1"]
    h1 = jnp.maximum(h1, 0.0).astype(jnp.bfloat16)
    h2 = jnp.dot(h1, w2, preferred_element_type=jnp.float32) + params["b2"]
    h2 = jnp.maximum(h2, 0.0).astype(jnp.bfloat16)
    return jnp.dot(h2, w3, preferred_element_type=jnp.float32) + params["b3"]


def _reference_forward_f32(x, params):
    x2d = x.reshape(-1, INPUT_SIZE).astype(jnp.float32)
    h1 = jnp.maximum(x2d @ params["w1"] + params["b1"], 0.0)
    h2 = jnp.maximum(h1 @ params["w2"] + params["b2"], 0.0)
    return h2 @ params["w3"] + params["b3"]


if __name__ == "__main__":
    key = jax.random.PRNGKey(0)
    k_params, k_x1, k_x2 = jax.random.split(key, 3)

    params = init_params(k_params)
    prepared = prepare_params(params)

    # Small MNIST-style NCHW input (single grid step, padded-batch path).
    x_small = jax.random.normal(k_x1, (2, 1, 28, 28), dtype=jnp.float32)
    out_small = jax.block_until_ready(digit_model_dnn_forward(x_small, prepared))
    assert out_small.shape == (2, OUTPUT_SIZE)
    assert jnp.allclose(out_small, _reference_forward_bf16(x_small, params),
                        atol=2e-2, rtol=2e-2)
    assert jnp.allclose(out_small, _reference_forward_f32(x_small, params),
                        atol=1e-1, rtol=1e-1)

    # Ragged batch (not a multiple of 8) to exercise padding + slicing.
    x_med = jax.random.normal(k_x2, (37, 1, 28, 28), dtype=jnp.float32)
    out_med = jax.block_until_ready(digit_model_dnn_forward(x_med, prepared))
    assert out_med.shape == (37, OUTPUT_SIZE)
    assert jnp.allclose(out_med, _reference_forward_bf16(x_med, params),
                        atol=2e-2, rtol=2e-2)

    print("KERNEL_OK")
</pallas_src>

<mosaic_0001>
module attributes {stable_mosaic.version = 11 : i64} {
  func.func @_mlp_kernel(%arg0: i32, %arg1: memref<8x784xf32, #tpu.memory_space<vmem>>, %arg2: memref<784x128xbf16, #tpu.memory_space<vmem>>, %arg3: memref<1x128xf32, #tpu.memory_space<vmem>>, %arg4: memref<128x128xbf16, #tpu.memory_space<vmem>>, %arg5: memref<1x128xf32, #tpu.memory_space<vmem>>, %arg6: memref<128x10xbf16, #tpu.memory_space<vmem>>, %arg7: memref<1x10xf32, #tpu.memory_space<vmem>>, %arg8: memref<8x10xf32, #tpu.memory_space<vmem>>) attributes {dimension_semantics = [#tpu.dimension_semantics<parallel>], iteration_bounds = array<i64: 1>, scalar_prefetch = 0 : i64, scratch_operands = 0 : i64, tpu.core_type = #tpu.core_type<tc>, window_params = [{transform_indices = @transform_0, window_bounds = array<i64: 8, 784>}, {pipeline_mode = #tpu.pipeline_mode<synchronous>, transform_indices = @transform_1, window_bounds = array<i64: 784, 128>}, {pipeline_mode = #tpu.pipeline_mode<synchronous>, transform_indices = @transform_2, window_bounds = array<i64: 1, 128>}, {pipeline_mode = #tpu.pipeline_mode<synchronous>, transform_indices = @transform_3, window_bounds = array<i64: 128, 128>}, {pipeline_mode = #tpu.pipeline_mode<synchronous>, transform_indices = @transform_4, window_bounds = array<i64: 1, 128>}, {pipeline_mode = #tpu.pipeline_mode<synchronous>, transform_indices = @transform_5, window_bounds = array<i64: 128, 10>}, {pipeline_mode = #tpu.pipeline_mode<synchronous>, transform_indices = @transform_6, window_bounds = array<i64: 1, 10>}, {transform_indices = @transform_7, window_bounds = array<i64: 8, 10>}]} {
    %c0 = arith.constant 0 : index
    %c0_0 = arith.constant 0 : index
    %0 = vector.load %arg1[%c0, %c0_0] : memref<8x784xf32, #tpu.memory_space<vmem>>, vector<8x784xf32>
    %1 = arith.truncf %0 : vector<8x784xf32> to vector<8x784xbf16>
    %c0_1 = arith.constant 0 : index
    %c0_2 = arith.constant 0 : index
    %2 = vector.load %arg2[%c0_1, %c0_2] : memref<784x128xbf16, #tpu.memory_space<vmem>>, vector<784x128xbf16>
    %cst = arith.constant dense<0.000000e+00> : vector<8x128xf32>
    %3 = tpu.matmul %1, %2, %cst {dimension_numbers = #tpu.dot_dimension_numbers<[1], [0], [0], [1], [0, 0, 1, 1], [], []>} : vector<8x784xbf16>, vector<784x128xbf16>, vector<8x128xf32> -> vector<8x128xf32>
    %c0_3 = arith.constant 0 : index
    %c0_4 = arith.constant 0 : index
    %4 = vector.load %arg3[%c0_3, %c0_4] : memref<1x128xf32, #tpu.memory_space<vmem>>, vector<1x128xf32>
    %5 = vector.broadcast %4 : vector<1x128xf32> to vector<8x128xf32>
    %6 = arith.addf %3, %5 : vector<8x128xf32>
    %cst_5 = arith.constant 0.000000e+00 : f32
    %7 = vector.broadcast %cst_5 : f32 to vector<8x128xf32>
    %8 = arith.maximumf %6, %7 : vector<8x128xf32>
    %9 = arith.truncf %8 : vector<8x128xf32> to vector<8x128xbf16>
    %c0_6 = arith.constant 0 : index
    %c0_7 = arith.constant 0 : index
    %10 = vector.load %arg4[%c0_6, %c0_7] : memref<128x128xbf16, #tpu.memory_space<vmem>>, vector<128x128xbf16>
    %cst_8 = arith.constant dense<0.000000e+00> : vector<8x128xf32>
    %11 = tpu.matmul %9, %10, %cst_8 {dimension_numbers = #tpu.dot_dimension_numbers<[1], [0], [0], [1], [0, 0, 1, 1], [], []>} : vector<8x128xbf16>, vector<128x128xbf16>, vector<8x128xf32> -> vector<8x128xf32>
    %c0_9 = arith.constant 0 : index
    %c0_10 = arith.constant 0 : index
    %12 = vector.load %arg5[%c0_9, %c0_10] : memref<1x128xf32, #tpu.memory_space<vmem>>, vector<1x128xf32>
    %13 = vector.broadcast %12 : vector<1x128xf32> to vector<8x128xf32>
    %14 = arith.addf %11, %13 : vector<8x128xf32>
    %cst_11 = arith.constant 0.000000e+00 : f32
    %15 = vector.broadcast %cst_11 : f32 to vector<8x128xf32>
    %16 = arith.maximumf %14, %15 : vector<8x128xf32>
    %17 = arith.truncf %16 : vector<8x128xf32> to vector<8x128xbf16>
    %c0_12 = arith.constant 0 : index
    %c0_13 = arith.constant 0 : index
    %18 = vector.load %arg6[%c0_12, %c0_13] : memref<128x10xbf16, #tpu.memory_space<vmem>>, vector<128x10xbf16>
    %cst_14 = arith.constant dense<0.000000e+00> : vector<8x10xf32>
    %19 = tpu.matmul %17, %18, %cst_14 {dimension_numbers = #tpu.dot_dimension_numbers<[1], [0], [0], [1], [0, 0, 1, 1], [], []>} : vector<8x128xbf16>, vector<128x10xbf16>, vector<8x10xf32> -> vector<8x10xf32>
    %c0_15 = arith.constant 0 : index
    %c0_16 = arith.constant 0 : index
    %20 = vector.load %arg7[%c0_15, %c0_16] : memref<1x10xf32, #tpu.memory_space<vmem>>, vector<1x10xf32>
    %21 = vector.broadcast %20 : vector<1x10xf32> to vector<8x10xf32>
    %22 = arith.addf %19, %21 : vector<8x10xf32>
    %c0_17 = arith.constant 0 : index
    %c0_18 = arith.constant 0 : index
    %23 = vector.load %arg8[%c0_17, %c0_18] : memref<8x10xf32, #tpu.memory_space<vmem>>, vector<8x10xf32>
    tpu.vector_store %arg8[%c0_17, %c0_18], %22 {strides = array<i32>} : memref<8x10xf32, #tpu.memory_space<vmem>>, vector<8x10xf32>,
    return
  }
  func.func @transform_0(%arg0: i32) -> (i32, i32) {
    %c0_i32 = arith.constant 0 : i32
    %c0_i32_0 = arith.constant 0 : i32
    return %arg0, %c0_i32 : i32, i32
  }
  func.func @transform_1(%arg0: i32) -> (i32, i32) {
    %c0_i32 = arith.constant 0 : i32
    %c0_i32_0 = arith.constant 0 : i32
    %c0_i32_1 = arith.constant 0 : i32
    return %c0_i32, %c0_i32_0 : i32, i32
  }
  func.func @transform_2(%arg0: i32) -> (i32, i32) {
    %c0_i32 = arith.constant 0 : i32
    %c0_i32_0 = arith.constant 0 : i32
    %c0_i32_1 = arith.constant 0 : i32
    return %c0_i32, %c0_i32_0 : i32, i32
  }
  func.func @transform_3(%arg0: i32) -> (i32, i32) {
    %c0_i32 = arith.constant 0 : i32
    %c0_i32_0 = arith.constant 0 : i32
    %c0_i32_1 = arith.constant 0 : i32
    return %c0_i32, %c0_i32_0 : i32, i32
  }
  func.func @transform_4(%arg0: i32) -> (i32, i32) {
    %c0_i32 = arith.constant 0 : i32
    %c0_i32_0 = arith.constant 0 : i32
    %c0_i32_1 = arith.constant 0 : i32
    return %c0_i32, %c0_i32_0 : i32, i32
  }
  func.func @transform_5(%arg0: i32) -> (i32, i32) {
    %c0_i32 = arith.constant 0 : i32
    %c0_i32_0 = arith.constant 0 : i32
    %c0_i32_1 = arith.constant 0 : i32
    return %c0_i32, %c0_i32_0 : i32, i32
  }
  func.func @transform_6(%arg0: i32) -> (i32, i32) {
    %c0_i32 = arith.constant 0 : i32
    %c0_i32_0 = arith.constant 0 : i32
    %c0_i32_1 = arith.constant 0 : i32
    return %c0_i32, %c0_i32_0 : i32, i32
  }
  func.func @transform_7(%arg0: i32) -> (i32, i32) {
    %c0_i32 = arith.constant 0 : i32
    %c0_i32_0 = arith.constant 0 : i32
    return %arg0, %c0_i32 : i32, i32
  }
}

</mosaic_0001>

<bundles_post_ra>
// kernel: tpu_custom_call.1
= control target key start
LH: loop header
LB: loop body
LE: loop exit
PB: predicated region body
PF: predicated region fallthrough
CT: control target
= control target key end

     0   :  { %12 = vsyncpa [#allocation3], 0  ;;  %s1390_s0 = inlined_call_operand.hbm [shape: f32[8,784], index: 0, kind: input, shape index: {}]   ;;  %s1391_s1 = inlined_call_operand.hbm [shape: bf16[784,128], index: 1, kind: input, shape index: {}]   ;;  %s1392_s2 = inlined_call_operand.vmem [shape: f32[1,128], index: 2, kind: input, shape index: {}]   ;;  %s1393_s3 = inlined_call_operand.vmem [shape: bf16[128,128], index: 3, kind: input, shape index: {}]   ;;  %s1394_s4 = inlined_call_operand.vmem [shape: f32[1,128], index: 4, kind: input, shape index: {}]   ;;  %s1395_s5 = inlined_call_operand.vmem [shape: bf16[128,10], index: 5, kind: input, shape index: {}]   ;;  %s1396_s6 = inlined_call_operand.vmem [shape: f32[1,10], index: 6, kind: input, shape index: {}]   ;;  %s1397_s7 = inlined_call_operand.hbm [shape: f32[8,10], index: 7, kind: output, shape index: {}]  }
   0x1   :  { %13 = vsyncpa [#allocation6], 0 }
   0x2   :  { %14 = vsyncpa [#allocation4], 0  ;;  %s1220_s24 = smov [#allocation2]   ;;  %s1221_s26 = smov [#allocation5]  }
   0x3   :  { %s21_s25 = sshll.u32 %s1220_s24, 4  ;;  %s30_s27 = sshll.u32 %s1221_s26, 4  ;;  %s22_s25 = int_to_ptr.vmem [resolvable:$true] %s21_s25  ;;  %s1267_s27 = int_to_ptr.vmem [resolvable:$true] %s30_s27 }
   0x4   :  { %s1148_s30 = scalar_lea.hbm %s1390_s0, 896 }
   0x5   :  { %p1149_p0 = scmp.ne.s32.totalorder %s1390_s0, %s1148_s30  ;;  %p1152_p1 = scmp.lt.u32.totalorder %s1148_s30, %s1390_s0 }
   0x7   :  { %p1154_p2 = pnand %p1152_p1, %p1149_p0 }
   0x9   :  { %1157 = shalt.err (!%p1154_p2)
}
   0xa   :  { %s1158_s12 = scalar_lea.vmem %s22_s25, 896  ;;  %p1163_p4 = scmp.lt.s32.totalorder %s22_s25, %s22_s25 }
   0xb   :  { %p1159_p3 = scmp.ne.s32.totalorder %s22_s25, %s1158_s12  ;;  %p1164_p5 = scmp.lt.s32.totalorder %s1158_s12, %s1158_s12 }
   0xd   :  { %p1165_p6 = por %p1164_p5, %p1163_p4 }
   0xf   :  { %p1166_p7 = pnand %p1165_p6, %p1159_p3 }
  0x11   :  { %1169 = shalt.err (!%p1166_p7)
}
  0x12   :  { %24 = dma.hbm_to_vmem [thread:$0]  %s1390_s0, 896, %s22_s25, [#allocation3]  }
  0x13   :  { %s1170_s17 = scalar_lea.hbm %s1391_s1, 6272 }
  0x14   :  { %p1171_p8 = scmp.ne.s32.totalorder %s1391_s1, %s1170_s17  ;;  %p1174_p9 = scmp.lt.u32.totalorder %s1170_s17, %s1391_s1 }
  0x16   :  { %p1176_p10 = pnand %p1174_p9, %p1171_p8 }
  0x18   :  { %1179 = shalt.err (!%p1176_p10)
}
  0x19   :  { %s1180_s22 = scalar_lea.vmem %s1267_s27, 6272  ;;  %p1185_p12 = scmp.lt.s32.totalorder %s1267_s27, %s1267_s27 }
  0x1a   :  { %p1181_p11 = scmp.ne.s32.totalorder %s1267_s27, %s1180_s22  ;;  %p1186_p13 = scmp.lt.s32.totalorder %s1180_s22, %s1180_s22 }
  0x1c   :  { %p1187_p0 = por %p1186_p13, %p1185_p12 }
  0x1e   :  { %p1188_p1 = pnand %p1187_p0, %p1181_p11 }
  0x20   :  { %1191 = shalt.err (!%p1188_p1)
}
  0x21   :  { %s1222_s0 = smov 64   ;;  %s1223_s23 = smov 4  }
  0x22   :  { %36 = dma.hbm_to_vmem [thread:$0]  %s1391_s1, 6272, %s1267_s27, [#allocation6], %s1222_s0, %s1222_s0, %s1223_s23  }
  0x23   :  { %1214 = dma.done.wait [#allocation3], 896  }
  0x24   :  { %1215 = vsyncadd [#allocation3], 4294966400 }
  0x25   :  { %1216 = dma.done.wait [#allocation6], 6272  }
  0x26   :  { %1217 = vsyncadd [#allocation6], 4294961024  ;;  %v1083_v0 = vld [vmem:[#allocation5 + $0x40] sm:$0xff]   ;;  %v1087_v4 = vld [vmem:[#allocation5 + $0x48] sm:$0xff]   ;;  %v1224_v44 = vmov 0.0   ;;  %vm1225_vm0 = vmmov 0  }
  0x27   :  { %v1084_v1 = vld [vmem:[#allocation5] sm:$0xff]   ;;  %944 = vmatprep.subr.bf16.mxu0 %v1083_v0  ;;  %v1088_v5 = vld [vmem:[#allocation5 + $0x8] sm:$0xff]   ;;  %v1091_v8 = vld [vmem:[#allocation5 + $0x50] sm:$0xff]   ;;  %vm467_vm1 = vcmask 130048   ;;  %s1226_s13 = smov [#allocation7]   ;;  %vm857_vm2 = vcmask 80896  }
  0x28   :  { %v1085_v2 = vld [vmem:[#allocation5 + $0xc0] sm:$0xff]   ;;  %945 = vmatpush3.bf16.msra.mxu0 %v1084_v1  ;;  %v1089_v6 = vld [vmem:[#allocation5 + $0xc8] sm:$0xff]   ;;  %v1092_v9 = vld [vmem:[#allocation5 + $0x10] sm:$0xff]   ;;  %s865_s14 = sshll.u32 %s1226_s13, 4  ;;  %s866_s14 = int_to_ptr.vmem [resolvable:$true] %s865_s14 }
  0x29   :  { %v1086_v3 = vld [vmem:[#allocation5 + $0x80] sm:$0xff]   ;;  %966 = vmatprep.subr.bf16.mxu1 %v1085_v2  ;;  %946 = vmatprep.subr.bf16.mxu0 %v1087_v4  ;;  %v1090_v7 = vld [vmem:[#allocation5 + $0x88] sm:$0xff]   ;;  %v1093_v10 = vld [vmem:[#allocation5 + $0xd0] sm:$0xff]   ;;  %p1197_p3 = scmp.lt.s32.totalorder %s866_s14, %s866_s14 }
  0x2a   :  { %967 = vmatpush3.bf16.msra.mxu1 %v1086_v3  ;;  %v1094_v11 = vld [vmem:[#allocation5 + $0x90] sm:$0xff]   ;;  %v1095_v12 = vld [vmem:[#allocation5 + $0x58] sm:$0xff]   ;;  %v1099_v16 = vld [vmem:[#allocation5 + $0x60] sm:$0xff]  }
  0x2b   :  { %968 = vmatprep.subr.bf16.mxu1 %v1089_v6  ;;  %v1096_v13 = vld [vmem:[#allocation5 + $0x18] sm:$0xff]   ;;  %v1100_v17 = vld [vmem:[#allocation5 + $0x20] sm:$0xff]   ;;  %v1103_v20 = vld [vmem:[#allocation5 + $0x68] sm:$0xff]  }
  0x2c   :  { %947 = vmatpush3.bf16.msra.mxu0 %v1088_v5  ;;  %v1097_v14 = vld [vmem:[#allocation5 + $0xd8] sm:$0xff]   ;;  %v1101_v18 = vld [vmem:[#allocation5 + $0xe0] sm:$0xff]   ;;  %v1104_v21 = vld [vmem:[#allocation5 + $0x28] sm:$0xff]  }
  0x2d   :  { %948 = vmatprep.subr.bf16.mxu0 %v1091_v8  ;;  %v1098_v15 = vld [vmem:[#allocation5 + $0x98] sm:$0xff]   ;;  %v1102_v19 = vld [vmem:[#allocation5 + $0xa0] sm:$0xff]   ;;  %v1105_v22 = vld [vmem:[#allocation5 + $0xe8] sm:$0xff]  }
  0x2e   :  { %969 = vmatpush3.bf16.msra.mxu1 %v1090_v7  ;;  %v1106_v23 = vld [vmem:[#allocation5 + $0xa8] sm:$0xff]   ;;  %v1107_v24 = vld [vmem:[#allocation5 + $0x70] sm:$0xff]   ;;  %v1111_v28 = vld [vmem:[#allocation5 + $0x78] sm:$0xff]  }
  0x2f   :  { %970 = vmatprep.subr.bf16.mxu1 %v1093_v10  ;;  %v1108_v25 = vld [vmem:[#allocation5 + $0x30] sm:$0xff]   ;;  %v1112_v29 = vld [vmem:[#allocation5 + $0x38] sm:$0xff]   ;;  %v54_v34 = vld [vmem:[#allocation2] sm:$0xff] }
  0x30   :  { %949 = vmatpush3.bf16.msra.mxu0 %v1092_v9  ;;  %v1109_v26 = vld [vmem:[#allocation5 + $0xf0] sm:$0xff]   ;;  %v1113_v30 = vld [vmem:[#allocation5 + $0xf8] sm:$0xff]   ;;  %v61_v35 = vpack.c.bf16 %v54_v34, %v54_v34  ;;  %v1115_v36 = vld [vmem:[#allocation5 + $0x140] sm:$0xff]  }
  0x31   :  { %950 = vmatprep.subr.bf16.mxu0 %v1095_v12  ;;  %v1110_v27 = vld [vmem:[#allocation5 + $0xb0] sm:$0xff]   ;;  %v1114_v33 = vld [vmem:[#allocation5 + $0xb8] sm:$0xff]   ;;  %v57_v37 = vld [vmem:[#allocation2 + $0x18] sm:$0xff] }
  0x32   :  { %971 = vmatpush3.bf16.msra.mxu1 %v1094_v11  ;;  %v55_v31 = vld [vmem:[#allocation2 + $0x8] sm:$0xff]  ;;  %v64_v38 = vpack.c.bf16 %v57_v37, %v57_v37  ;;  %v1116_v39 = vld [vmem:[#allocation5 + $0x100] sm:$0xff]   ;;  %v56_v40 = vld [vmem:[#allocation2 + $0x10] sm:$0xff] }
  0x33   :  { %972 = vmatprep.subr.bf16.mxu1 %v1097_v14  ;;  %v62_v32 = vpack.c.bf16 %v55_v31, %v55_v31  ;;  %v63_v41 = vpack.c.bf16 %v56_v40, %v56_v40  ;;  %v1117_v42 = vld [vmem:[#allocation5 + $0x148] sm:$0xff]   ;;  %v1119_v45 = vld [vmem:[#allocation5 + $0x150] sm:$0xff]   ;;  %v1121_v47 = vld [vmem:[#allocation5 + $0x158] sm:$0xff]  }
  0x34   :  { %951 = vmatpush3.bf16.msra.mxu0 %v1096_v13  ;;  %543 = vmatprep.mubr.bf16.mxu1 %v64_v38  ;;  %v1118_v43 = vld [vmem:[#allocation5 + $0x108] sm:$0xff]   ;;  %v1120_v46 = vld [vmem:[#allocation5 + $0x110] sm:$0xff]   ;;  %v1122_v48 = vld [vmem:[#allocation5 + $0x118] sm:$0xff]  }
  0x35   :  { %952 = vmatprep.subr.bf16.mxu0 %v1099_v16  ;;  %503 = vmatprep.mubr.bf16.mxu0 %v62_v32  ;;  %v1123_v49 = vld [vmem:[#allocation5 + $0x160] sm:$0xff]   ;;  %v1125_v51 = vld [vmem:[#allocation5 + $0x168] sm:$0xff]   ;;  %v59_v54 = vld [vmem:[#allocation2 + $0x28] sm:$0xff] }
  0x36   :  { %973 = vmatpush3.bf16.msra.mxu1 %v1098_v15  ;;  %v1124_v50 = vld [vmem:[#allocation5 + $0x120] sm:$0xff]   ;;  %v1126_v52 = vld [vmem:[#allocation5 + $0x128] sm:$0xff]   ;;  %v1127_v55 = vld [vmem:[#allocation5 + $0x170] sm:$0xff]   ;;  %v66_v56 = vpack.c.bf16 %v59_v54, %v59_v54 }
  0x37   :  { %974 = vmatprep.subr.bf16.mxu1 %v1101_v18  ;;  %v1131_v53 = vld [vmem:[#allocation5 + $0x180] sm:$0xff]   ;;  %v60_v57 = vld [vmem:[#allocation2 + $0x30] sm:$0xff]  ;;  %v1128_v59 = vld [vmem:[#allocation5 + $0x130] sm:$0xff]  }
  0x38   :  { %953 = vmatpush3.bf16.msra.mxu0 %v1100_v17  ;;  %v67_v58 = vpack.c.bf16 %v60_v57, %v60_v57  ;;  %v1129_v60 = vld [vmem:[#allocation5 + $0x178] sm:$0xff]   ;;  %v58_v62 = vld [vmem:[#allocation2 + $0x20] sm:$0xff]  ;;  %v1133_v1 = vld [vmem:[%s1393_s3 + $0x8] sm:$0xff]  }
  0x39   :  { %954 = vmatprep.subr.bf16.mxu0 %v1103_v20  ;;  %v1130_v61 = vld [vmem:[#allocation5 + $0x138] sm:$0xff]   ;;  %v65_v63 = vpack.c.bf16 %v58_v62, %v58_v62  ;;  %v1132_v0 = vld [vmem:[%s1393_s3] sm:$0xff]   ;;  %v1135_v3 = vld [vmem:[%s1393_s3 + $0x18] sm:$0xff]  }
  0x3a   :  { %975 = vmatpush3.bf16.msra.mxu1 %v1102_v19  ;;  %v1134_v2 = vld [vmem:[%s1393_s3 + $0x10] sm:$0xff]   ;;  %v1136_v4 = vld [vmem:[%s1393_s3 + $0x20] sm:$0xff]   ;;  %v1137_v5 = vld [vmem:[%s1393_s3 + $0x28] sm:$0xff]  }
  0x3b   :  { %976 = vmatprep.subr.bf16.mxu1 %v1105_v22  ;;  %v1138_v6 = vld [vmem:[%s1393_s3 + $0x30] sm:$0xff]   ;;  %v1139_v7 = vld [vmem:[%s1393_s3 + $0x38] sm:$0xff]   ;;  %v1140_v8 = vld [vmem:[%s1395_s5] sm:$0xff]  }
  0x3c   :  { %955 = vmatpush3.bf16.msra.mxu0 %v1104_v21  ;;  %v1141_v9 = vld [vmem:[%s1395_s5 + $0x8] sm:$0xff]   ;;  %v1142_v10 = vld [vmem:[%s1395_s5 + $0x10] sm:$0xff]   ;;  %v1143_v11 = vld [vmem:[%s1395_s5 + $0x18] sm:$0xff]  }
  0x3d   :  { %956 = vmatprep.subr.bf16.mxu0 %v1107_v24  ;;  %v1144_v12 = vld [vmem:[%s1395_s5 + $0x20] sm:$0xff]   ;;  %v1145_v13 = vld [vmem:[%s1395_s5 + $0x28] sm:$0xff]   ;;  %v1146_v40 = vld [vmem:[%s1395_s5 + $0x30] sm:$0xff]  }
  0x3e   :  { %977 = vmatpush3.bf16.msra.mxu1 %v1106_v23  ;;  %v875_v15 = vld [vmem:[%s1392_s2] ss:$0 sm:$0xff] }
  0x3f   :  { %978 = vmatprep.subr.bf16.mxu1 %v1109_v26 }
  0x40   :  { %957 = vmatpush3.bf16.msra.mxu0 %v1108_v25 }
  0x41   :  { %958 = vmatprep.subr.bf16.mxu0 %v1111_v28 }
  0x42   :  { %979 = vmatpush3.bf16.msra.mxu1 %v1110_v27 }
  0x43   :  { %980 = vmatprep.subr.bf16.mxu1 %v1113_v30 }
  0x44   :  { %959 = vmatpush3.bf16.msra.mxu0 %v1112_v29 }
  0x45   :  { %988 = vmatprep.subr.bf16.mxu0 %v1115_v36 }
  0x46   :  { %981 = vmatpush3.bf16.msra.mxu1 %v1114_v33 }
  0x47   :  { %504 = vmatmul.mubr.bf16.vlgmr.msra.gmra.mrb[0].mxu0 %v61_v35  ;;  %1030 = vmatprep.subr.bf16.mxu1 %v1224_v44 }
  0x48   :  { %989 = vmatpush3.bf16.msra.mxu0 %v1116_v39  ;;  %583 = vmatprep.mubr.bf16.mxu0 %v66_v56 }
  0x49   :  { %544 = vmatmul.mubr.bf16.vlgmr.msra.gmra.mrb[0].mxu1 %v63_v41  ;;  %990 = vmatprep.subr.bf16.mxu0 %v1117_v42  ;;  %v1147_v41 = vld [vmem:[%s1395_s5 + $0x38] sm:$0xff]   ;;  %v926_v42 = vld [vmem:[%s1394_s4] ss:$0 sm:$0xff]  ;;  %s1192_s4 = scalar_lea.vmem %s866_s14, 128 }
  0x4a   :  { %1032 = vmatprep.mubr.msk.bf16.mxu1 %vm1225_vm0, %v1224_v44  ;;  %1031 = vmatpush3.bf16.msra.mxu1 %v1131_v53  ;;  %p1193_p2 = scmp.ne.s32.totalorder %s866_s14, %s1192_s4  ;;  %p1198_p4 = scmp.lt.s32.totalorder %s1192_s4, %s1192_s4 }
  0x4b   :  { %1036 = vmatprep.subr.bf16.mxu1 %v1224_v44 }
  0x4c   :  { %991 = vmatpush3.bf16.msra.mxu0 %v1118_v43  ;;  %p1199_p5 = por %p1198_p4, %p1197_p3 }
  0x4d   :  { %992 = vmatprep.subr.bf16.mxu0 %v1119_v45 }
  0x4e   :  { %p1200_p6 = pnand %p1199_p5, %p1193_p2 }
  0x50   :  { %993 = vmatpush3.bf16.msra.mxu0 %v1120_v46 }
  0x51   :  { %994 = vmatprep.subr.bf16.mxu0 %v1121_v47  ;;  %1033 = vmatmul.mubr.msk.bf16.vlgmr.msra.gmra.mrb[4].mxu1 %vm467_vm1, %v67_v58 }
  0x52   :  { %1052 = vmatprep.mubr.msk.bf16.mxu1 %vm1225_vm0, %v1224_v44  ;;  %1037 = vmatpush3.bf16.msra.mxu1 %v1132_v0 }
  0x53   :  { %1038 = vmatprep.subr.bf16.mxu1 %v1224_v44 }
  0x54   :  { %995 = vmatpush3.bf16.msra.mxu0 %v1122_v48 }
  0x55   :  { %996 = vmatprep.subr.bf16.mxu0 %v1123_v49 }
  0x56   :  { %1039 = vmatpush3.bf16.msra.mxu1 %v1133_v1 }
  0x57   :  { %1040 = vmatprep.subr.bf16.mxu1 %v1224_v44 }
  0x58   :  { %997 = vmatpush3.bf16.msra.mxu0 %v1124_v50 }
  0x59   :  { %998 = vmatprep.subr.bf16.mxu0 %v1125_v51 }
  0x5a   :  { %1041 = vmatpush3.bf16.msra.mxu1 %v1134_v2 }
  0x5b   :  { %1042 = vmatprep.subr.bf16.mxu1 %v1224_v44 }
  0x5c   :  { %999 = vmatpush3.bf16.msra.mxu0 %v1126_v52 }
  0x5d   :  { %1000 = vmatprep.subr.bf16.mxu0 %v1127_v55 }
  0x5e   :  { %1043 = vmatpush3.bf16.msra.mxu1 %v1135_v3 }
  0x5f   :  { %1044 = vmatprep.subr.bf16.mxu1 %v1224_v44 }
  0x60   :  { %1001 = vmatpush3.bf16.msra.mxu0 %v1128_v59 }
  0x61   :  { %1002 = vmatprep.subr.bf16.mxu0 %v1129_v60 }
  0x62   :  { %1045 = vmatpush3.bf16.msra.mxu1 %v1136_v4 }
  0x63   :  { %1046 = vmatprep.subr.bf16.mxu1 %v1224_v44 }
  0x64   :  { %1003 = vmatpush3.bf16.msra.mxu0 %v1130_v61 }
  0x65   :  { %1056 = vmatprep.subr.bf16.mxu0 %v1224_v44 }
  0x66   :  { %1047 = vmatpush3.bf16.msra.mxu1 %v1137_v5 }
  0x67   :  { %584 = vmatmul.mubr.bf16.vlgmr.msra.gmra.mrb[4].mxu0 %v65_v63  ;;  %1048 = vmatprep.subr.bf16.mxu1 %v1224_v44 }
  0x68   :  { %1072 = vmatprep.mubr.msk.bf16.mxu0 %vm1225_vm0, %v1224_v44  ;;  %1057 = vmatpush3.bf16.msra.mxu0 %v1140_v8 }
  0x69   :  { %1058 = vmatprep.subr.bf16.mxu0 %v1224_v44 }
  0x6a   :  { %1049 = vmatpush3.bf16.msra.mxu1 %v1138_v6 }
  0x6b   :  { %1050 = vmatprep.subr.bf16.mxu1 %v1224_v44 }
  0x6c   :  { %1059 = vmatpush3.bf16.msra.mxu0 %v1141_v9 }
  0x6d   :  { %1060 = vmatprep.subr.bf16.mxu0 %v1224_v44 }
  0x6e   :  { %1051 = vmatpush3.bf16.msra.mxu1 %v1139_v7 }
  0x70   :  { %1061 = vmatpush3.bf16.msra.mxu0 %v1142_v10 }
  0x71   :  { %1062 = vmatprep.subr.bf16.mxu0 %v1224_v44 }
  0x74   :  { %1063 = vmatpush3.bf16.msra.mxu0 %v1143_v11 }
  0x75   :  { %1064 = vmatprep.subr.bf16.mxu0 %v1224_v44 }
  0x78   :  { %1065 = vmatpush3.bf16.msra.mxu0 %v1144_v12 }
  0x79   :  { %1066 = vmatprep.subr.bf16.mxu0 %v1224_v44 }
  0x7c   :  { %1067 = vmatpush3.bf16.msra.mxu0 %v1145_v13 }
  0x7d   :  { %1068 = vmatprep.subr.bf16.mxu0 %v1224_v44 }
  0x80   :  { %1069 = vmatpush3.bf16.msra.mxu0 %v1146_v40 }
  0x81   :  { %1070 = vmatprep.subr.bf16.mxu0 %v1224_v44  ;;  %v935_v44 = vld [vmem:[%s1396_s6] ss:$0 sm:$0xff] }
  0x84   :  { %1071 = vmatpush3.bf16.msra.mxu0 %v1147_v41 }
 0x11a   :  { %v960_v14 = vpop.f32.mrb[0].mxu0 }
 0x11b   :  { %v961_v16 = vpop.f32.mrb[1].mxu0 }
 0x11c   :  { %v962_v17 = vadd.f32 %v961_v16, %v960_v14  ;;  %v963_v18 = vpop.f32.mrb[2].mxu0  ;;  %v982_v19 = vpop.f32.mrb[0].mxu1 }
 0x11d   :  { %v964_v20 = vpop.f32.mrb[3].mxu0  ;;  %v983_v22 = vpop.f32.mrb[1].mxu1 }
 0x11e   :  { %v506_v21 = vadd.f32 %v962_v17, %v875_v15  ;;  %v984_v23 = vadd.f32 %v983_v22, %v982_v19  ;;  %v985_v24 = vpop.f32.mrb[2].mxu1 }
 0x11f   :  { %v986_v25 = vpop.f32.mrb[3].mxu1 }
 0x120   :  { %v546_v26 = vadd.f32 %v984_v23, %v506_v21 }
 0x124   :  { %v625_v27 = vpop.f32.mrb[4].mxu1 }
 0x125   :  { %v1034_v28 = vpop.f32.mrb[5].mxu1 }
 0x126   :  { %v628_v29 = vpop.f32.mrb[6].mxu1 }
 0x127   :  { %v1035_v30 = vpop.f32.mrb[7].mxu1 }
 0x13a   :  { %v1004_v31 = vpop.f32.mrb[4].mxu0 }
 0x13b   :  { %v1005_v32 = vpop.f32.mrb[5].mxu0 }
 0x13c   :  { %v1006_v33 = vadd.f32 %v1005_v32, %v1004_v31  ;;  %v1007_v34 = vpop.f32.mrb[6].mxu0 }
 0x13d   :  { %v1008_v35 = vpop.f32.mrb[7].mxu0 }
 0x13e   :  { %v586_v36 = vadd.f32 %v1006_v33, %v546_v26 }
 0x140   :  { %v626_v37 = vadd.f32 %v625_v27, %v586_v36 }
 0x142   :  { %v631_v38 = vmax.f32 %v626_v37, 0.0 }
 0x144   :  { %v632_v39 = vpack.c.bf16 %v631_v38, %v631_v38 }
 0x146   :  { %1053 = vmatmul.mubr.bf16.vlgmr.msra.gmra.mrb[8].mxu1 %v632_v39 }
 0x219   :  { %v738_v43 = vpop.f32.mrb[8].mxu1 }
 0x21a   :  { %v739_v45 = vadd.f32 %v926_v42, %v738_v43  ;;  %v1054_v46 = vpop.f32.mrb[9].mxu1 }
 0x21b   :  { %v741_v47 = vpop.f32.mrb[10].mxu1 }
 0x21c   :  { %v744_v48 = vmax.f32 %v739_v45, 0.0  ;;  %v1055_v49 = vpop.f32.mrb[11].mxu1 }
 0x21e   :  { %v745_v50 = vpack.c.bf16 %v744_v48, %v744_v48 }
 0x220   :  { %1073 = vmatmul.mubr.bf16.vlgmr.msra.gmra.mrb[8].mxu0 %v745_v50 }
 0x2f3   :  { %v851_v51 = vpop.f32.mrb[8].mxu0 }
 0x2f4   :  { %v852_v52 = vadd.f32 %v935_v44, %v851_v51  ;;  %v1074_v53 = vpop.f32.mrb[9].mxu0 }
 0x2f5   :  { %v854_v54 = vpop.f32.mrb[10].mxu0 }
 0x2f6   :  { %v1075_v55 = vpop.f32.mrb[11].mxu0  ;;  %858 = vst.msk [vmem:[#allocation7] sm:$0xff] %vm857_vm2, %v852_v52 }
 0x2f7   :  { %1203 = shalt.err (!%p1200_p6)
}
 0x2f8   :  { %s1204_s6 = scalar_lea.hbm %s1397_s7, 128 }
 0x2f9   :  { %p1205_p7 = scmp.ne.s32.totalorder %s1397_s7, %s1204_s6  ;;  %p1208_p8 = scmp.lt.u32.totalorder %s1204_s6, %s1397_s7 }
 0x2fb   :  { %p1210_p9 = pnand %p1208_p8, %p1205_p7 }
 0x2fd   :  { %1213 = shalt.err (!%p1210_p9)
}
 0x2fe   :  { %868 = dma.vmem_to_hbm [thread:$0]  %s866_s14, 128, %s1397_s7, [#allocation4]  }
 0x2ff   :  { %1218 = dma.done.wait [#allocation4], 128  }
 0x300   :  { %1219 = vsyncadd [#allocation4], 4294967168 }
 0x301   :  { %872 = vsyncpa [#allocation3], 1 }
 0x302   :  { %873 = vsyncpa [#allocation6], 1 }
 0x303   :  { %874 = vsyncpa [#allocation4], 1 }

</bundles_post_ra>
